<compile_context>
chip_gen: v5e
topology: v5e:2x2
jax: 0.10.0
libtpu: 0.0.40
codegen_flags: <defaults>
</compile_context>

<pallas_src>
import functools

import jax
import jax.numpy as jnp
from jax.experimental import pallas as pl
from jax.experimental.pallas import tpu as pltpu


def _round_up(x, m):
    return ((x + m - 1) // m) * m


# ---------------------------------------------------------------------------
# Kernel: fused tiled matmul + bias epilogue
# ---------------------------------------------------------------------------
def linear_kernel(x_ref, wt_ref, b_ref, o_ref, acc_ref):
    """x:(tm,tk) bf16, wt:(tk,tn) bf16, b:(1,tn) f32, o:(tm,tn), acc:(tm,tn) f32."""
    k = pl.program_id(2)

    @pl.when(k == 0)
    def _():
        acc_ref[...] = jnp.zeros_like(acc_ref)

    acc_ref[...] += jnp.dot(x_ref[...], wt_ref[...],
                            preferred_element_type=jnp.float32)

    @pl.when(k == pl.num_programs(2) - 1)
    def _():
        o_ref[...] = (acc_ref[...] + b_ref[...]).astype(o_ref.dtype)


# ---------------------------------------------------------------------------
# Wrapper: PyTorch nn.Linear semantics  y = x @ W.T + b
# ---------------------------------------------------------------------------
def linear(x, w, b, *, tm=128, tn=128, tk=256):
    M, K = x.shape
    N, K2 = w.shape
    assert K == K2 and b.shape == (N,), "incompatible dimensions"
    out_dtype = x.dtype

    # bf16 operands for the MXU (fp16 in the Triton reference); f32 bias / accum.
    xq = x.astype(jnp.bfloat16)
    wt = w.T.astype(jnp.bfloat16)                  # (K, N) canonical MXU layout
    bq = b.astype(jnp.float32).reshape(1, N)       # lane-dense bias row

    # Clamp tiles to the (aligned) problem size, then pad to tile multiples.
    tm_ = min(tm, _round_up(M, 8))
    tk_ = min(tk, _round_up(K, 128))
    tn_ = min(tn, _round_up(N, 128))
    Mp, Kp, Np = _round_up(M, tm_), _round_up(K, tk_), _round_up(N, tn_)

    if (Mp, Kp) != (M, K):
        xq = jnp.pad(xq, ((0, Mp - M), (0, Kp - K)))
    if (Kp, Np) != (K, N):
        wt = jnp.pad(wt, ((0, Kp - K), (0, Np - N)))
    if Np != N:
        bq = jnp.pad(bq, ((0, 0), (0, Np - N)))

    grid = (Mp // tm_, Np // tn_, Kp // tk_)
    out = pl.pallas_call(
        linear_kernel,
        out_shape=jax.ShapeDtypeStruct((Mp, Np), out_dtype),
        grid=grid,
        in_specs=[
            pl.BlockSpec((tm_, tk_), lambda i, j, k: (i, k)),
            pl.BlockSpec((tk_, tn_), lambda i, j, k: (k, j)),
            pl.BlockSpec((1, tn_), lambda i, j, k: (0, j)),
        ],
        out_specs=pl.BlockSpec((tm_, tn_), lambda i, j, k: (i, j)),
        scratch_shapes=[pltpu.VMEM((tm_, tn_), jnp.float32)],
        compiler_params=pltpu.CompilerParams(
            dimension_semantics=("parallel", "parallel", "arbitrary")),
    )(xq, wt, bq)
    return out[:M, :N]


# ---------------------------------------------------------------------------
def _reference(x, w, b):
    return (x.astype(jnp.float32) @ w.astype(jnp.float32).T
            + b.astype(jnp.float32)).astype(x.dtype)


def _run_case(key, M, K, N):
    kx, kw, kb = jax.random.split(key, 3)
    x = 0.1 * jax.random.normal(kx, (M, K), jnp.float32)
    w = 0.1 * jax.random.normal(kw, (N, K), jnp.float32)
    b = 0.1 * jax.random.normal(kb, (N,), jnp.float32)

    y = jax.jit(linear)(x, w, b)
    jax.block_until_ready(y)

    y_ref = _reference(x, w, b)
    assert y.shape == (M, N)
    assert jnp.all(jnp.isfinite(y))
    # bf16 matmul operands -> loose tolerance vs. the f32 reference.
    assert jnp.allclose(y, y_ref, rtol=2e-2, atol=2e-2), (
        f"mismatch for ({M},{K},{N}): max abs err "
        f"{float(jnp.max(jnp.abs(y - y_ref)))}")


if __name__ == "__main__":
    key = jax.random.PRNGKey(0)
    k1, k2 = jax.random.split(key)

    # Small shapes consistent with the Linear module (bs, din) x (dout, din).
    _run_case(k1, M=16, K=256, N=384)   # aligned case
    _run_case(k2, M=5, K=70, N=33)      # ragged case exercising the padding path

    print("KERNEL_OK")
</pallas_src>

<mosaic_0001>
module attributes {stable_mosaic.version = 11 : i64} {
  func.func @linear_kernel(%arg0: i32, %arg1: i32, %arg2: i32, %arg3: memref<16x256xbf16, #tpu.memory_space<vmem>>, %arg4: memref<256x128xbf16, #tpu.memory_space<vmem>>, %arg5: memref<1x128xf32, #tpu.memory_space<vmem>>, %arg6: memref<16x128xf32, #tpu.memory_space<vmem>>, %arg7: memref<16x128xf32, #tpu.memory_space<vmem>>) attributes {dimension_semantics = [#tpu.dimension_semantics<parallel>, #tpu.dimension_semantics<parallel>, #tpu.dimension_semantics<arbitrary>], iteration_bounds = array<i64: 1, 3, 1>, scalar_prefetch = 0 : i64, scratch_operands = 1 : i64, tpu.core_type = #tpu.core_type<tc>, window_params = [{transform_indices = @transform_0, window_bounds = array<i64: 16, 256>}, {transform_indices = @transform_1, window_bounds = array<i64: 256, 128>}, {transform_indices = @transform_2, window_bounds = array<i64: 1, 128>}, {transform_indices = @transform_3, window_bounds = array<i64: 16, 128>}]} {
    %c0_i32 = arith.constant 0 : i32
    %0 = arith.cmpi eq, %arg2, %c0_i32 : i32
    %1 = arith.extui %0 : i1 to i32
    %c0_i32_0 = arith.constant 0 : i32
    %2 = arith.cmpi ne, %1, %c0_i32_0 : i32
    scf.if %2 {
      %cst_10 = arith.constant 0.000000e+00 : f32
      %12 = vector.broadcast %cst_10 : f32 to vector<16x128xf32>
      %c0_11 = arith.constant 0 : index
      %c0_12 = arith.constant 0 : index
      %13 = vector.load %arg7[%c0_11, %c0_12] : memref<16x128xf32, #tpu.memory_space<vmem>>, vector<16x128xf32>
      tpu.vector_store %arg7[%c0_11, %c0_12], %12 {strides = array<i32>} : memref<16x128xf32, #tpu.memory_space<vmem>>, vector<16x128xf32>,
    } else {
    }
    %c0 = arith.constant 0 : index
    %c0_1 = arith.constant 0 : index
    %3 = vector.load %arg7[%c0, %c0_1] : memref<16x128xf32, #tpu.memory_space<vmem>>, vector<16x128xf32>
    %c0_2 = arith.constant 0 : index
    %c0_3 = arith.constant 0 : index
    %4 = vector.load %arg3[%c0_2, %c0_3] : memref<16x256xbf16, #tpu.memory_space<vmem>>, vector<16x256xbf16>
    %c0_4 = arith.constant 0 : index
    %c0_5 = arith.constant 0 : index
    %5 = vector.load %arg4[%c0_4, %c0_5] : memref<256x128xbf16, #tpu.memory_space<vmem>>, vector<256x128xbf16>
    %cst = arith.constant dense<0.000000e+00> : vector<16x128xf32>
    %6 = tpu.matmul %4, %5, %cst {dimension_numbers = #tpu.dot_dimension_numbers<[1], [0], [0], [1], [0, 0, 1, 1], [], []>} : vector<16x256xbf16>, vector<256x128xbf16>, vector<16x128xf32> -> vector<16x128xf32>
    %7 = arith.addf %3, %6 : vector<16x128xf32>
    %c0_6 = arith.constant 0 : index
    %c0_7 = arith.constant 0 : index
    %8 = vector.load %arg7[%c0_6, %c0_7] : memref<16x128xf32, #tpu.memory_space<vmem>>, vector<16x128xf32>
    tpu.vector_store %arg7[%c0_6, %c0_7], %7 {strides = array<i32>} : memref<16x128xf32, #tpu.memory_space<vmem>>, vector<16x128xf32>,
    %c0_i32_8 = arith.constant 0 : i32
    %9 = arith.cmpi eq, %arg2, %c0_i32_8 : i32
    %10 = arith.extui %9 : i1 to i32
    %c0_i32_9 = arith.constant 0 : i32
    %11 = arith.cmpi ne, %10, %c0_i32_9 : i32
    scf.if %11 {
      %c0_10 = arith.constant 0 : index
      %c0_11 = arith.constant 0 : index
      %12 = vector.load %arg7[%c0_10, %c0_11] : memref<16x128xf32, #tpu.memory_space<vmem>>, vector<16x128xf32>
      %c0_12 = arith.constant 0 : index
      %c0_13 = arith.constant 0 : index
      %13 = vector.load %arg5[%c0_12, %c0_13] : memref<1x128xf32, #tpu.memory_space<vmem>>, vector<1x128xf32>
      %14 = vector.broadcast %13 : vector<1x128xf32> to vector<16x128xf32>
      %15 = arith.addf %12, %14 : vector<16x128xf32>
      %c0_14 = arith.constant 0 : index
      %c0_15 = arith.constant 0 : index
      %16 = vector.load %arg6[%c0_14, %c0_15] : memref<16x128xf32, #tpu.memory_space<vmem>>, vector<16x128xf32>
      tpu.vector_store %arg6[%c0_14, %c0_15], %15 {strides = array<i32>} : memref<16x128xf32, #tpu.memory_space<vmem>>, vector<16x128xf32>,
    } else {
    }
    return
  }
  func.func @transform_0(%arg0: i32, %arg1: i32, %arg2: i32) -> (i32, i32) {
    %c0_i32 = arith.constant 0 : i32
    return %arg0, %arg2 : i32, i32
  }
  func.func @transform_1(%arg0: i32, %arg1: i32, %arg2: i32) -> (i32, i32) {
    %c0_i32 = arith.constant 0 : i32
    return %arg2, %arg1 : i32, i32
  }
  func.func @transform_2(%arg0: i32, %arg1: i32, %arg2: i32) -> (i32, i32) {
    %c0_i32 = arith.constant 0 : i32
    %c0_i32_0 = arith.constant 0 : i32
    return %c0_i32, %arg1 : i32, i32
  }
  func.func @transform_3(%arg0: i32, %arg1: i32, %arg2: i32) -> (i32, i32) {
    %c0_i32 = arith.constant 0 : i32
    return %arg0, %arg1 : i32, i32
  }
}

</mosaic_0001>

<bundles_post_ra>
// kernel: linear.1
= control target key start
LH: loop header
LB: loop body
LE: loop exit
PB: predicated region body
PF: predicated region fallthrough
CT: control target
= control target key end

     0   :  { %8 = vsyncpa [#allocation5], 0  ;;  %s1216_s0 = inlined_call_operand.vmem [shape: bf16[16,256], index: 0, kind: input, shape index: {}]   ;;  %s1217_s1 = inlined_call_operand.vmem [shape: bf16[256,384], index: 1, kind: input, shape index: {}]   ;;  %s1218_s2 = inlined_call_operand.vmem [shape: f32[1,384], index: 2, kind: input, shape index: {}]   ;;  %s1219_s3 = inlined_call_operand.hbm [shape: f32[16,384], index: 3, kind: output, shape index: {}]  }
   0x1   :  { %10 = vsyncpa [#allocation5 + $0x1], 0  ;;  %s1009_s12 = smov 0   ;;  %s1011_s13 = smov 0  }
   0x2   :  { %s1013_s14 = smov 0   ;;  %s1015_s15 = smov 0  }
   0x3   :  { %s1017_s16 = smov 0   ;;  %s1019_s17 = smov 0  }
   0x4 LB: > { %s743_s18 = sadd.s32 4294967295, %s984_s17   ;;  %s744_s19 = sadd.s32 4294967294, %s984_s17   ;;  %s984_s17 = sphi %s1019_s17, %s16_s17   ;;  %s980_s16 = sphi %s1017_s16, %s1226_s16   ;;  %s976_s15 = sphi %s1015_s15, %s1225_s15   ;;  %s972_s14 = sphi %s1013_s14, %s1224_s14   ;;  %s968_s13 = sphi %s1011_s13, %s1223_s13   ;;  %s964_s12 = sphi %s1009_s12, %s1222_s12  }
   0x5   : > { %s31_s20 = sadd.s32 1, %s980_s16  ;;  %s72_s21 = sadd.s32 1, %s972_s14 }
   0x6   : > { %p33_p0 = scmp.ge.s32.totalorder %s31_s20, 3  ;;  %p79_p1 = scmp.ne.s32.totalorder %s972_s14, %s968_s13 }
   0x7   : > { %p80_p2 = scmp.eq.s32.totalorder %s984_s17, 0  ;;  %p137_p3 = scmp.eq.s32.totalorder %s743_s18, 2 }
   0x8   : > { %s1228_s20 = smov (%p33_p0, %s31_s20), 0  ;;  %p142_p6 = scmp.ne.s32.totalorder %s968_s13, %s964_s12 }
   0x9   : > { %p81_p4 = por %p80_p2, %p79_p1  ;;  %p1048_p5 = por %p137_p3, %p79_p1 }
   0xa   : > { %s68_s23 = ssub.s32 %s980_s16, %s1228_s20  ;;  %p143_p8 = scmp.eq.s32.totalorder %s744_s19, 2 }
   0xb   : > { %p70_p7 = scmp.eq.s32.totalorder %s68_s23, 0  ;;  %p747_p10 = scmp.ge.s32.totalorder %s984_s17, 3 }
   0xc   : > { %p1059_p9 = por %p143_p8, %p142_p6 }
   0xd   : > { %s1057_s24 = scalar_select %p70_p7, %s972_s14, %s72_s21  }
   0xe   : > { %174 = sbr.rel (%p747_p10) target bundleno = 55 (0x37), region = 20 }
  0x13   : > { %177 = sbr.rel (!%p81_p4) target bundleno = 55 (0x37), region = 24  ;;  %s179_s26 = sand.u32 (%p81_p4), 1, %s972_s14  }
  0x14   : > { %s749_s27 = sshll.u32 (%p81_p4), %s980_s16, 2  ;;  %s748_s28 = sshll.u32 (%p81_p4), %s179_s26, 7 }
  0x15   : > { %s1069_s4 = scalar_lea.vmem (%p81_p4), %s1217_s1, %s749_s27  ;;  %s1073_s5 = scalar_lea.vmem (%p81_p4), [#allocation3], %s748_s28 }
  0x16   : > { %v203_v0 = vld [vmem:[%s1069_s4] sm:$0xf] (%p81_p4)  ;;  %v205_v1 = vld [vmem:[%s1069_s4 + $0xc] sm:$0xf] (%p81_p4)  ;;  %v207_v2 = vld [vmem:[%s1069_s4 + $0x18] sm:$0xf] (%p81_p4) }
  0x17   : > { %204 = vst [vmem:[%s1073_s5] sm:$0xf] (%p81_p4), %v203_v0  ;;  %v209_v3 = vld [vmem:[%s1069_s4 + $0x24] sm:$0xf] (%p81_p4)  ;;  %v211_v4 = vld [vmem:[%s1069_s4 + $0x30] sm:$0xf] (%p81_p4) }
  0x18   : > { %206 = vst [vmem:[%s1073_s5 + $0x4] sm:$0xf] %v205_v1  ;;  %v213_v5 = vld [vmem:[%s1069_s4 + $0x3c] sm:$0xf]  ;;  %v215_v6 = vld [vmem:[%s1069_s4 + $0x48] sm:$0xf] }
  0x19   : > { %208 = vst [vmem:[%s1073_s5 + $0x8] sm:$0xf] %v207_v2  ;;  %v217_v7 = vld [vmem:[%s1069_s4 + $0x54] sm:$0xf]  ;;  %v219_v8 = vld [vmem:[%s1069_s4 + $0x60] sm:$0xf] }
  0x1a   : > { %210 = vst [vmem:[%s1073_s5 + $0xc] sm:$0xf] %v209_v3  ;;  %v221_v9 = vld [vmem:[%s1069_s4 + $0x6c] sm:$0xf]  ;;  %v223_v10 = vld [vmem:[%s1069_s4 + $0x78] sm:$0xf] }
  0x1b   : > { %212 = vst [vmem:[%s1073_s5 + $0x10] sm:$0xf] %v211_v4  ;;  %v225_v11 = vld [vmem:[%s1069_s4 + $0x84] sm:$0xf]  ;;  %v227_v12 = vld [vmem:[%s1069_s4 + $0x90] sm:$0xf] }
  0x1c   : > { %214 = vst [vmem:[%s1073_s5 + $0x14] sm:$0xf] %v213_v5  ;;  %v229_v13 = vld [vmem:[%s1069_s4 + $0x9c] sm:$0xf]  ;;  %v231_v14 = vld [vmem:[%s1069_s4 + $0xa8] sm:$0xf] }
  0x1d   : > { %216 = vst [vmem:[%s1073_s5 + $0x18] sm:$0xf] %v215_v6  ;;  %v233_v15 = vld [vmem:[%s1069_s4 + $0xb4] sm:$0xf]  ;;  %v235_v16 = vld [vmem:[%s1069_s4 + $0xc0] sm:$0xf] }
  0x1e   : > { %218 = vst [vmem:[%s1073_s5 + $0x1c] sm:$0xf] %v217_v7  ;;  %v237_v17 = vld [vmem:[%s1069_s4 + $0xcc] sm:$0xf]  ;;  %v239_v18 = vld [vmem:[%s1069_s4 + $0xd8] sm:$0xf] }
  0x1f   : > { %220 = vst [vmem:[%s1073_s5 + $0x20] sm:$0xf] %v219_v8  ;;  %v241_v19 = vld [vmem:[%s1069_s4 + $0xe4] sm:$0xf]  ;;  %v243_v20 = vld [vmem:[%s1069_s4 + $0xf0] sm:$0xf] }
  0x20   : > { %222 = vst [vmem:[%s1073_s5 + $0x24] sm:$0xf] %v221_v9  ;;  %v245_v21 = vld [vmem:[%s1069_s4 + $0xfc] sm:$0xf]  ;;  %v247_v22 = vld [vmem:[%s1069_s4 + $0x108] sm:$0xf] }
  0x21   : > { %224 = vst [vmem:[%s1073_s5 + $0x28] sm:$0xf] %v223_v10  ;;  %v249_v23 = vld [vmem:[%s1069_s4 + $0x114] sm:$0xf]  ;;  %v251_v24 = vld [vmem:[%s1069_s4 + $0x120] sm:$0xf] }
  0x22   : > { %226 = vst [vmem:[%s1073_s5 + $0x2c] sm:$0xf] %v225_v11  ;;  %v253_v25 = vld [vmem:[%s1069_s4 + $0x12c] sm:$0xf]  ;;  %v255_v26 = vld [vmem:[%s1069_s4 + $0x138] sm:$0xf] }
  0x23   : > { %228 = vst [vmem:[%s1073_s5 + $0x30] sm:$0xf] %v227_v12  ;;  %v257_v27 = vld [vmem:[%s1069_s4 + $0x144] sm:$0xf]  ;;  %v259_v28 = vld [vmem:[%s1069_s4 + $0x150] sm:$0xf] }
  0x24   : > { %230 = vst [vmem:[%s1073_s5 + $0x34] sm:$0xf] %v229_v13  ;;  %v261_v29 = vld [vmem:[%s1069_s4 + $0x15c] sm:$0xf]  ;;  %v263_v30 = vld [vmem:[%s1069_s4 + $0x168] sm:$0xf] }
  0x25   : > { %232 = vst [vmem:[%s1073_s5 + $0x38] sm:$0xf] %v231_v14  ;;  %v265_v31 = vld [vmem:[%s1069_s4 + $0x174] sm:$0xf] }
  0x26   : > { %234 = vst [vmem:[%s1073_s5 + $0x3c] sm:$0xf] %v233_v15 }
  0x27   : > { %236 = vst [vmem:[%s1073_s5 + $0x40] sm:$0xf] %v235_v16 }
  0x28   : > { %238 = vst [vmem:[%s1073_s5 + $0x44] sm:$0xf] %v237_v17 }
  0x29   : > { %240 = vst [vmem:[%s1073_s5 + $0x48] sm:$0xf] %v239_v18 }
  0x2a   : > { %242 = vst [vmem:[%s1073_s5 + $0x4c] sm:$0xf] %v241_v19 }
  0x2b   : > { %244 = vst [vmem:[%s1073_s5 + $0x50] sm:$0xf] %v243_v20 }
  0x2c   : > { %246 = vst [vmem:[%s1073_s5 + $0x54] sm:$0xf] %v245_v21 }
  0x2d   : > { %248 = vst [vmem:[%s1073_s5 + $0x58] sm:$0xf] %v247_v22 }
  0x2e   : > { %250 = vst [vmem:[%s1073_s5 + $0x5c] sm:$0xf] %v249_v23 }
  0x2f   : > { %252 = vst [vmem:[%s1073_s5 + $0x60] sm:$0xf] %v251_v24 }
  0x30   : > { %254 = vst [vmem:[%s1073_s5 + $0x64] sm:$0xf] %v253_v25 }
  0x31   : > { %256 = vst [vmem:[%s1073_s5 + $0x68] sm:$0xf] %v255_v26 }
  0x32   : > { %258 = vst [vmem:[%s1073_s5 + $0x6c] sm:$0xf] %v257_v27 }
  0x33   : > { %260 = vst [vmem:[%s1073_s5 + $0x70] sm:$0xf] %v259_v28 }
  0x34   : > { %262 = vst [vmem:[%s1073_s5 + $0x74] sm:$0xf] %v261_v29 }
  0x35   : > { %264 = vst [vmem:[%s1073_s5 + $0x78] sm:$0xf] %v263_v30 }
  0x36   : > { %266 = vst [vmem:[%s1073_s5 + $0x7c] sm:$0xf] %v265_v31 }
  0x37 PF: > { %p750_p11 = scmp.ge.s32.totalorder %s984_s17, 1  ;;  %p359_p12 = scmp.lt.s32.totalorder %s984_s17, 4 }
  0x39   : > { %p360_p13 = pnand %p750_p11, %p359_p12 }
  0x3a   : > { %s1140_s6 = sand.u32 (!%p360_p13), 1, %s968_s13   ;;  %p415_p0 = scmp.lt.s32.totalorder (!%p360_p13), %s976_s15, 2 }
  0x3b   : > { %363 = sbr.rel (%p360_p13) target bundleno = 240 (0xf0), region = 69  ;;  %s751_s7 = sshll.u32 (!%p360_p13), %s1140_s6, 7 }
  0x3c   : > { %s1143_s8 = scalar_lea.vmem (!%p360_p13), [#allocation3], %s751_s7  ;;  %s752_s4 = sshll.u32 (!%p360_p13), %s1140_s6, 4 }
  0x3d   : > { %s826_s5 = sshll.u32 (!%p360_p13), %s976_s15, 3  ;;  %s401_s10 = scalar_lea.vmem (!%p360_p13), [#allocation4], %s752_s4 }
  0x3e   : > { %s626_s9 = scalar_lea.hbm (!%p360_p13), %s1219_s3, %s826_s5  ;;  %s627_s11 = sshll.u32 (!%p360_p13), %s401_s10, 4  ;;  %s628_s11 = int_to_ptr.vmem [resolvable:$true] %s627_s11 }
  0x3f   : > { %s629_s18 = sshll.u32 (!%p360_p13), %s626_s9, 4  ;;  %s613_s19 = scalar_lea.sflag (!%p360_p13), [#allocation5], %s1140_s6  ;;  %s630_s18 = int_to_ptr.hbm [resolvable:$true] %s629_s18 }
  0x40   : > { %v838_v32 = vld [vmem:[%s1143_s8 + $0x38] sm:$0xff]  ;;  %v837_v34 = vld [vmem:[%s1143_s8 + $0x30] sm:$0xff]  ;;  %v836_v36 = vld [vmem:[%s1143_s8 + $0x28] sm:$0xff]  ;;  %s416_s27 = scalar_select %p415_p0, %s976_s15, 2 }
  0x41   : > { %v846_v33 = vld [vmem:[%s1143_s8 + $0x78] sm:$0xff]  ;;  %567 = vmatpush.bf16.msra.mxu0 %v838_v32  ;;  %v845_v35 = vld [vmem:[%s1143_s8 + $0x70] sm:$0xff]  ;;  %v844_v37 = vld [vmem:[%s1143_s8 + $0x68] sm:$0xff]  ;;  %s920_s21 = sshra.s32 %s630_s18, 4  ;;  %s921_s21 = int_to_ptr.hbm [resolvable:$true] %s920_s21 }
  0x42   : > { %581 = vmatpush.bf16.msra.mxu1 %v846_v33  ;;  %v835_v38 = vld [vmem:[%s1143_s8 + $0x20] sm:$0xff]  ;;  %v834_v40 = vld [vmem:[%s1143_s8 + $0x18] sm:$0xff]  ;;  %v833_v42 = vld [vmem:[%s1143_s8 + $0x10] sm:$0xff]  ;;  %s417_s30 = scalar_lea.vmem %s1218_s2, %s416_s27  ;;  %s922_s15 = scalar_lea.hbm %s921_s21, 16 }
  0x43   : > { %v843_v39 = vld [vmem:[%s1143_s8 + $0x60] sm:$0xff]  ;;  %v842_v41 = vld [vmem:[%s1143_s8 + $0x58] sm:$0xff]  ;;  %v841_v43 = vld [vmem:[%s1143_s8 + $0x50] sm:$0xff]  ;;  %p923_p1 = scmp.ne.s32.totalorder %s921_s21, %s922_s15  ;;  %s926_s27 = scalar_lea.hbm %s1219_s3, 48 }
  0x44   : > { %v832_v44 = vld [vmem:[%s1143_s8 + $0x8] sm:$0xff]  ;;  %v755_v46 = vld [vmem:[%s1216_s0] sm:$0xf]  ;;  %v829_v48 = vld [vmem:[%s1216_s0 + $0x4] sm:$0xf]  ;;  %p927_p4 = scmp.lt.s32.totalorder %s921_s21, %s1219_s3  ;;  %p928_p6 = scmp.lt.s32.totalorder %s926_s27, %s922_s15 }
  0x45   : > { %568 = vmatpush.bf16.msra.mxu0 %v837_v34  ;;  %v840_v45 = vld [vmem:[%s1143_s8 + $0x48] sm:$0xff]  ;;  %v831_v49 = vld [vmem:[%s1143_s8] sm:$0xff]  ;;  %p924_p2 = pnand %p923_p1, %p1048_p5 }
  0x46   : > { %582 = vmatpush.bf16.msra.mxu1 %v845_v35  ;;  %v830_v47 = vld [vmem:[%s1216_s0 + $0x4] sm:$0xf0]  ;;  %v839_v50 = vld [vmem:[%s1143_s8 + $0x40] sm:$0xff]  ;;  %v757_v51 = vld [vmem:[%s1216_s0 + $0x8] sm:$0xf0]  ;;  %p929_p7 = por %p928_p6, %p927_p4 }
  0x47   : > { %v756_v52 = vor.u32 %v830_v47, %v755_v46  ;;  %v760_v53 = vor.u32 %v829_v48, %v757_v51  ;;  %v905_v54 = vld [vmem:[%s417_s30] ss:$0 sm:$0xff]  ;;  %p925_p3 = pneg %p924_p2 }
  0x49   : > { %569 = vmatpush.bf16.msra.mxu0 %v836_v36  ;;  %p930_p8 = pnand %p929_p7, %p925_p3 }
  0x4a   : > { %583 = vmatpush.bf16.msra.mxu1 %v844_v37 }
  0x4d   : > { %570 = vmatpush.bf16.msra.mxu0 %v835_v38 }
  0x4e   : > { %584 = vmatpush.bf16.msra.mxu1 %v843_v39 }
  0x51   : > { %571 = vmatpush.bf16.msra.mxu0 %v834_v40 }
  0x52   : > { %585 = vmatpush.bf16.msra.mxu1 %v842_v41 }
  0x55   : > { %572 = vmatpush.bf16.msra.mxu0 %v833_v42 }
  0x56   : > { %586 = vmatpush.bf16.msra.mxu1 %v841_v43 }
  0x59   : > { %573 = vmatpush.bf16.msra.mxu0 %v832_v44 }
  0x5a   : > { %587 = vmatpush.bf16.msra.mxu1 %v840_v45 }
  0x5d   : > { %574 = vmatpush.bf16.msra.mxu0 %v831_v49 }
  0x5e   : > { %588 = vmatpush.bf16.msra.mxu1 %v839_v50 }
  0x60   : > { %575 = vmatmul.bf16.vlgmr.msra.gmra.mxu0 %v756_v52 }
  0x61   : > { %589 = vmatmul.bf16.vlgmr.msra.gmra.mxu1 %v760_v53 }
  0xdd   : > { %v576_v55 = vpop.f32.mrf.mxu0 }
  0xde   : > { %v590_v56 = vpop.f32.mrf.mxu1 }
  0xdf   : > { %v591_v57 = vadd.f32 %v590_v56, %v576_v55 }
  0xe1   : > { %v608_v58 = vadd.f32 %v905_v54, %v591_v57 }
  0xe3   : > { %610 = vst [vmem:[%s401_s10] sm:$0xff] %v608_v58 }
  0xe5   : > { %v578_v59 = vpop.f32.mrf.mxu0 }
  0xe6   : > { %v592_v60 = vpop.f32.mrf.mxu1 }
  0xe7   : > { %v593_v61 = vadd.f32 %v592_v60, %v578_v59 }
  0xe9   : > { %v609_v62 = vadd.f32 %v905_v54, %v593_v61 }
  0xeb   : > { %611 = vst [vmem:[%s401_s10 + $0x8] sm:$0xff] %v609_v62 }
  0xec   : > { %933 = shalt.err (!%p930_p8)
}
  0xed   : > { %s986_s6 = smov 128   ;;  %s987_s30 = smov 384  }
  0xee   : > { %s988_s4 = smov 8  }
  0xef   : > { %847 = dma.vmem_to_hbm [thread:$0]  (%p1048_p5), %s628_s11, 256, %s630_s18, %s613_s19, %s986_s6, %s987_s30, %s988_s4  }
  0xf0 PF: > { %p853_p10 = scmp.ge.s32.totalorder %s984_s17, 2  ;;  %s644_s5 = sand.u32 1, %s964_s12  }
  0xf1   : > { %s645_s7 = scalar_lea.sflag [#allocation5], %s644_s5 }
  0xf2   : > { %p850_p11 = pnand %p853_p10, %p1059_p9 }
  0xf4   : > { %p851_p12 = pneg %p850_p11 }
  0xf6   : > { %959 = dma.done.wait (%p851_p12), %s645_s7, 256  }
  0xf7   : > { %961 = vsyncadd (%p851_p12), %s645_s7, 4294967040  ;;  %s16_s17 = sadd.s32 1, %s984_s17   ;;  %s1222_s12 = smov %s968_s13 }
  0xf8   : > { %p13_p13 = scmp.ge.s32.totalorder %s16_s17, 5   ;;  %s1223_s13 = smov %s972_s14 }
  0xf9   : > { %s1224_s14 = smov %s1057_s24  ;;  %s1225_s15 = smov %s980_s16 }
  0xfa   : > { %s1226_s16 = smov %s1228_s20  ;;  %15 = sbr.rel (!%p13_p13) target bundleno = 4 (0x4), region = 127 }
  0xff   :  { %651 = vsyncpa [#allocation5], 1 }
 0x100   :  { %653 = vsyncpa [#allocation5 + $0x1], 1 }

</bundles_post_ra>
